<compile_context>
chip_gen: v7x
topology: tpu7x:2x2x1
jax: 0.10.0
libtpu: 0.0.40
codegen_flags: <defaults>
</compile_context>

<pallas_src>
import jax
import jax.numpy as jnp
from jax.experimental import pallas as pl
from jax.experimental.pallas import tpu as pltpu


def _round_up(x, m):
    return (x + m - 1) // m * m


def _cdiv(a, b):
    return (a + b - 1) // b


def _vmem_capacity_bytes():
    try:
        return int(pltpu.get_tpu_info().vmem_capacity_bytes)
    except Exception:
        return 64 * 1024 * 1024            # conservative fallback (v7x per-core VMEM)


def _conve_kernel(conv_ref,                     # SMEM (3, Cp) f32: w0', w1', cb' (bn1 folded)
                  head_ref, rel_ref, tail_ref,  # VMEM [tb, Ep] bf16
                  wt_ref,                       # VMEM [ck*Ep, Ep] bf16 fc1 weight chunk
                  bn3_ref,                      # VMEM [2, Ep] f32: (s3, s3*fc_b + t3)
                  out_ref,                      # VMEM [tb, 1] f32
                  acc_ref):                     # VMEM scratch [tb, Ep] f32 accumulator
    k = pl.program_id(1)
    ep = head_ref.shape[1]
    ck = wt_ref.shape[0] // ep                  # static python int

    @pl.when(k == 0)
    def _():
        acc_ref[...] = jnp.zeros_like(acc_ref)

    # Conv elementwise math in f32 (safe on v5e; tight match with the reference).
    head = head_ref[...].astype(jnp.float32)
    rel = rel_ref[...].astype(jnp.float32)

    acc = acc_ref[...]
    for cc in range(ck):                        # ck is small and static -> unrolled
        c = k * ck + cc                         # global channel index
        w0 = conv_ref[0, c]                     # SMEM scalar reads (dynamic index ok)
        w1 = conv_ref[1, c]
        cb = conv_ref[2, c]
        # Conv2d(1, C, (2,1)) + bias (+ folded bn1) + ReLU for one output channel.
        act = jnp.maximum(head * w0 + rel * w1 + cb, 0.0)
        # Channel-major flatten + fc1: accumulate this channel's [Ep, Ep] weight slice.
        acc = acc + jnp.dot(act.astype(wt_ref.dtype),
                            wt_ref[cc * ep:(cc + 1) * ep, :],
                            preferred_element_type=jnp.float32)
    acc_ref[...] = acc

    @pl.when(k == pl.num_programs(1) - 1)
    def _():
        # (fc1 bias + bn3) folded into a single scale/shift, then ReLU.
        y = jnp.maximum(acc_ref[...] * bn3_ref[0:1, :] + bn3_ref[1:2, :], 0.0)
        # score[b] = sum_e y[b, e] * tail[b, e]
        out_ref[...] = jnp.sum(y * tail_ref[...].astype(jnp.float32),
                               axis=1, keepdims=True)


def _choose_batch_tile(B, Ep, ck, vmem_cap):
    """Honest per-step VMEM accounting -> batch tile + vmem_limit_bytes."""
    budget = min(int(vmem_cap * 0.6), 96 * 1024 * 1024)
    # Fixed per-step cost: double-buffered bf16 weight chunk + bn3 constants.
    fixed = 2 * (ck * Ep) * Ep * 2 + 2 * (2 * Ep) * 4
    # Per-batch-row: 3 double-buffered bf16 inputs + f32 accumulator
    # + f32/bf16 activation & cast temporaries + output.
    per_row = 3 * 2 * Ep * 2 + Ep * 4 + Ep * (4 + 2 + 8) + 2 * 4
    avail = max(budget - fixed, 16 * per_row)
    tb = min(512, max(16, (avail // per_row) // 16 * 16), _round_up(B, 16))

    def n_tiles(t):
        return _round_up(B, t) // t

    # Prefer >= 2 (and, for larger B, an even number of) batch tiles so both v7x
    # TensorCores get balanced work; v5e/v6e (single TC) are unaffected.
    if B > 16 and n_tiles(tb) < 2:
        tb = max(16, _round_up(_cdiv(_round_up(B, 16), 2), 16))
    n_i = n_tiles(tb)
    if n_i > 2 and n_i % 2 == 1:
        tb2 = max(16, _round_up(_cdiv(B, n_i + 1), 16))
        if n_tiles(tb2) % 2 == 0:
            tb = tb2

    est = fixed + per_row * tb
    vmem_limit = int(min(0.9 * vmem_cap, max(32 * 1024 * 1024, 2 * est)))
    return tb, vmem_limit


def conve_pallas(prep, head_e, rel_e, tail_e):
    """head_e / rel_e / tail_e: [B, Ep] bf16 gathered, lane-padded embeddings."""
    B, Ep = head_e.shape
    ck = prep["ck"]
    Cp = prep["wt"].shape[0] // Ep
    nk = Cp // ck
    vmem_cap = _vmem_capacity_bytes()
    tb, vmem_limit = _choose_batch_tile(B, Ep, ck, vmem_cap)

    B_pad = _round_up(B, tb)
    if B_pad != B:
        pad = B_pad - B
        head_e = jnp.pad(head_e, ((0, pad), (0, 0)))
        rel_e = jnp.pad(rel_e, ((0, pad), (0, 0)))
        tail_e = jnp.pad(tail_e, ((0, pad), (0, 0)))

    emb_spec = pl.BlockSpec((tb, Ep), lambda i, k, conv: (i, 0))

    out = pl.pallas_call(
        _conve_kernel,
        out_shape=jax.ShapeDtypeStruct((B_pad, 1), jnp.float32),
        grid_spec=pltpu.PrefetchScalarGridSpec(
            num_scalar_prefetch=1,                     # conv scalars -> SMEM
            grid=(B_pad // tb, nk),
            in_specs=[
                emb_spec, emb_spec, emb_spec,                            # head, rel, tail
                pl.BlockSpec((ck * Ep, Ep), lambda i, k, conv: (k, 0)),  # fc1 weight chunk
                pl.BlockSpec((2, Ep), lambda i, k, conv: (0, 0)),        # folded bn3
            ],
            out_specs=pl.BlockSpec((tb, 1), lambda i, k, conv: (i, 0)),
            scratch_shapes=[pltpu.VMEM((tb, Ep), jnp.float32)],
        ),
        compiler_params=pltpu.CompilerParams(
            dimension_semantics=("parallel", "arbitrary"),
            vmem_limit_bytes=vmem_limit,
        ),
    )(prep["conv"], head_e, rel_e, tail_e, prep["wt"], prep["bn3"])
    return out[:B]


def init_params(key, n_nodes, n_rels, embedding_size, out_channels):
    """Raw (PyTorch-shaped) parameters; embeddings + fc1 weight stored in bf16."""
    E, C = embedding_size, out_channels
    ks = jax.random.split(key, 10)
    eps = 1e-5
    p = {}
    p["node_emb"] = jax.random.normal(ks[0], (n_nodes, E), jnp.float32).astype(jnp.bfloat16)
    p["rel_emb"] = jax.random.normal(ks[1], (n_rels, E), jnp.float32).astype(jnp.bfloat16)
    # nn.Conv2d(1, C, kernel_size=(2, 1), bias=True): weight [C, 1, 2, 1]
    conv_w = jax.random.normal(ks[2], (C, 1, 2, 1), jnp.float32) * 0.5
    p["conv_w0"] = conv_w[:, 0, 0, 0]
    p["conv_w1"] = conv_w[:, 0, 1, 0]
    p["conv_b"] = jax.random.normal(ks[3], (C,), jnp.float32) * 0.1
    # nn.Linear(C*E, E): weight [E, C*E], bias [E]
    fc_w = jax.random.normal(ks[4], (E, C * E), jnp.float32) / jnp.sqrt(float(C * E))
    p["fc_w"] = fc_w.astype(jnp.bfloat16)
    p["fc_b"] = jax.random.normal(ks[5], (E,), jnp.float32) * 0.1
    # bn1 = BatchNorm2d(1), eval mode -> scalar scale/shift folded from running stats
    g1 = 1.0 + 0.1 * jax.random.normal(ks[6], (), jnp.float32)
    b1 = 0.1 * jax.random.normal(ks[7], (), jnp.float32)
    rm1, rv1 = jnp.float32(0.05), jnp.float32(1.2)
    s1 = g1 / jnp.sqrt(rv1 + eps)
    p["bn1_s"] = s1
    p["bn1_t"] = b1 - rm1 * s1
    # bn3 = BatchNorm1d(E), eval mode -> per-feature scale/shift
    g3 = 1.0 + 0.1 * jax.random.normal(ks[8], (E,), jnp.float32)
    b3 = 0.1 * jax.random.normal(ks[9], (E,), jnp.float32)
    rm3 = jnp.full((E,), 0.02, jnp.float32)
    rv3 = jnp.full((E,), 0.9, jnp.float32)
    s3 = g3 / jnp.sqrt(rv3 + eps)
    p["bn3_s"] = s3
    p["bn3_t"] = b3 - rm3 * s3
    return p


def prepare_params(params):
    """One-time layout prep: pad E to a multiple of 128, fold bn1 into the conv
    weights/bias, fold fc1 bias + bn3 into a (scale, shift) pair, and reshape
    fc1.weight to the channel-major [Cp*Ep, Ep] layout the kernel consumes."""
    E = params["node_emb"].shape[1]
    C = params["conv_w0"].shape[0]
    Ep = max(128, _round_up(E, 128))
    pe = Ep - E
    vmem_cap = _vmem_capacity_bytes()

    node = jnp.pad(params["node_emb"], ((0, 0), (0, pe)))         # bf16, zero pad lanes
    rel = jnp.pad(params["rel_emb"], ((0, 0), (0, pe)))

    # bn1 (eval) folded into the conv: conv(s1*x + t1) = (w*s1)*x + ((w0+w1)*t1 + b)
    s1, t1 = params["bn1_s"], params["bn1_t"]
    w0 = params["conv_w0"] * s1
    w1 = params["conv_w1"] * s1
    cb = params["conv_b"] + (params["conv_w0"] + params["conv_w1"]) * t1

    # Channel chunk: keep the double-buffered bf16 weight slice <= ~1/4 of VMEM.
    ck = int(max(1, min(C, (vmem_cap // 4) // max(1, 2 * 2 * Ep * Ep))))
    Cp = _round_up(C, ck)
    pc = Cp - C
    conv = jnp.stack([jnp.pad(w0, (0, pc)), jnp.pad(w1, (0, pc)),
                      jnp.pad(cb, (0, pc))]).astype(jnp.float32)  # (3, Cp) SMEM scalars

    # fc1.weight [E, C*E] -> channel-major [C, E, E] -> zero-pad -> [Cp*Ep, Ep] bf16.
    # Zero padded rows keep the (possibly nonzero) activation in padded lanes from
    # leaking into the scores; zero padded columns keep the padded output lanes zero.
    wt = params["fc_w"].T.reshape(C, E, E)
    wt = jnp.pad(wt, ((0, pc), (0, pe), (0, pe))).reshape(Cp * Ep, Ep)

    # fc1 bias + bn3 (eval) folded: y = (z @ W) * s3 + (s3 * fc_b + t3)
    s3 = params["bn3_s"]
    t3p = s3 * params["fc_b"] + params["bn3_t"]
    bn3 = jnp.stack([jnp.pad(s3, (0, pe)),
                     jnp.pad(t3p, (0, pe))]).astype(jnp.float32)  # (2, Ep), zero pads

    return dict(node_emb=node, rel_emb=rel, conv=conv, wt=wt, bn3=bn3, ck=ck)


def wrapper_convkb_forward(prep, edge_idx, edge_type):
    # Glue: gather per-edge embeddings (h[row], g[rel], h[col]) in plain JAX.
    # TODO(synk): for very large B, fuse the gather into the kernel via scalar
    #   prefetch + manual DMA to save one HBM round trip (kernel is compute-bound).
    row, col = edge_idx[0], edge_idx[1]
    head_e = prep["node_emb"][row]
    tail_e = prep["node_emb"][col]
    rel_e = prep["rel_emb"][edge_type]
    return conve_pallas(prep, head_e, rel_e, tail_e)


def reference_forward(params, edge_idx, edge_type):
    """Pure-JAX mirror of the PyTorch forward (eval mode) on the bf16-stored params.
    The activation is rounded to bf16 before fc1 to match the kernel's MXU inputs."""
    row, col = edge_idx[0], edge_idx[1]
    head = params["node_emb"][row].astype(jnp.float32)
    rel = params["rel_emb"][edge_type].astype(jnp.float32)
    tail = params["node_emb"][col].astype(jnp.float32)
    s1, t1 = params["bn1_s"], params["bn1_t"]
    head_bn = head * s1 + t1
    rel_bn = rel * s1 + t1
    feat = (params["conv_w0"][None, :, None] * head_bn[:, None, :]
            + params["conv_w1"][None, :, None] * rel_bn[:, None, :]
            + params["conv_b"][None, :, None])                       # [B, C, E]
    feat = jnp.maximum(feat, 0.0)
    z = feat.reshape(feat.shape[0], -1)                              # channel-major flatten
    z = z.astype(jnp.bfloat16).astype(jnp.float32)
    y = z @ params["fc_w"].astype(jnp.float32).T + params["fc_b"][None, :]
    y = y * params["bn3_s"][None, :] + params["bn3_t"][None, :]
    y = jnp.maximum(y, 0.0)
    return jnp.sum(y * tail, axis=1, keepdims=True)


if __name__ == "__main__":
    key = jax.random.PRNGKey(0)
    n_nodes, n_rels = 12, 5
    embedding_size, out_channels = 32, 4
    n_edges = 32                                   # -> tb=16, 2 batch tiles

    kp, ke1, ke2, ke3 = jax.random.split(key, 4)
    params = init_params(kp, n_nodes, n_rels, embedding_size, out_channels)
    prep = prepare_params(params)

    row = jax.random.randint(ke1, (n_edges,), 0, n_nodes, jnp.int32)
    col = jax.random.randint(ke2, (n_edges,), 0, n_nodes, jnp.int32)
    edge_idx = jnp.stack([row, col], axis=0)                          # [2, B]
    edge_type = jax.random.randint(ke3, (n_edges,), 0, n_rels, jnp.int32)

    preds = wrapper_convkb_forward(prep, edge_idx, edge_type)
    preds = jax.block_until_ready(preds)

    ref = reference_forward(params, edge_idx, edge_type)
    assert preds.shape == (n_edges, 1)
    assert jnp.allclose(preds, ref, atol=2e-2, rtol=2e-2), (preds, ref)
    print("KERNEL_OK")
</pallas_src>

<mosaic_0001>
module attributes {stable_mosaic.version = 11 : i64} {
  func.func @_conve_kernel(%arg0: i32, %arg1: i32, %arg2: memref<3x4xf32, #tpu.memory_space<smem>>, %arg3: memref<16x128xbf16, #tpu.memory_space<vmem>>, %arg4: memref<16x128xbf16, #tpu.memory_space<vmem>>, %arg5: memref<16x128xbf16, #tpu.memory_space<vmem>>, %arg6: memref<512x128xbf16, #tpu.memory_space<vmem>>, %arg7: memref<2x128xf32, #tpu.memory_space<vmem>>, %arg8: memref<16x1xf32, #tpu.memory_space<vmem>>, %arg9: memref<16x128xf32, #tpu.memory_space<vmem>>) attributes {dimension_semantics = [#tpu.dimension_semantics<parallel>, #tpu.dimension_semantics<arbitrary>], iteration_bounds = array<i64: 2, 1>, scalar_prefetch = 1 : i64, scratch_operands = 1 : i64, tpu.core_type = #tpu.core_type<tc>, window_params = [{transform_indices = @transform_0, window_bounds = array<i64: 16, 128>}, {transform_indices = @transform_1, window_bounds = array<i64: 16, 128>}, {transform_indices = @transform_2, window_bounds = array<i64: 16, 128>}, {transform_indices = @transform_3, window_bounds = array<i64: 512, 128>}, {pipeline_mode = #tpu.pipeline_mode<synchronous>, transform_indices = @transform_4, window_bounds = array<i64: 2, 128>}, {transform_indices = @transform_5, window_bounds = array<i64: 16, 1>}]} {
    %c0_i32 = arith.constant 0 : i32
    %0 = arith.cmpi eq, %arg1, %c0_i32 : i32
    %1 = arith.extui %0 : i1 to i32
    %c0_i32_0 = arith.constant 0 : i32
    %2 = arith.cmpi ne, %1, %c0_i32_0 : i32
    scf.if %2 {
      %cst_36 = arith.constant 0.000000e+00 : f32
      %96 = vector.broadcast %cst_36 : f32 to vector<16x128xf32>
      %c0_37 = arith.constant 0 : index
      %c0_38 = arith.constant 0 : index
      %97 = vector.load %arg9[%c0_37, %c0_38] : memref<16x128xf32, #tpu.memory_space<vmem>>, vector<16x128xf32>
      tpu.vector_store %arg9[%c0_37, %c0_38], %96 {strides = array<i32>} : memref<16x128xf32, #tpu.memory_space<vmem>>, vector<16x128xf32>,
    } else {
    }
    %c0 = arith.constant 0 : index
    %c0_1 = arith.constant 0 : index
    %3 = vector.load %arg3[%c0, %c0_1] : memref<16x128xbf16, #tpu.memory_space<vmem>>, vector<16x128xbf16>
    %4 = arith.extf %3 : vector<16x128xbf16> to vector<16x128xf32>
    %c0_2 = arith.constant 0 : index
    %c0_3 = arith.constant 0 : index
    %5 = vector.load %arg4[%c0_2, %c0_3] : memref<16x128xbf16, #tpu.memory_space<vmem>>, vector<16x128xbf16>
    %6 = arith.extf %5 : vector<16x128xbf16> to vector<16x128xf32>
    %c0_4 = arith.constant 0 : index
    %c0_5 = arith.constant 0 : index
    %7 = vector.load %arg9[%c0_4, %c0_5] : memref<16x128xf32, #tpu.memory_space<vmem>>, vector<16x128xf32>
    %c4_i32 = arith.constant 4 : i32
    %8 = arith.muli %arg1, %c4_i32 : i32
    %c0_i32_6 = arith.constant 0 : i32
    %9 = arith.addi %8, %c0_i32_6 : i32
    %c0_7 = arith.constant 0 : index
    %10 = arith.index_cast %9 : i32 to index
    %11 = memref.load %arg2[%c0_7, %10] : memref<3x4xf32, #tpu.memory_space<smem>>
    %c1 = arith.constant 1 : index
    %12 = arith.index_cast %9 : i32 to index
    %13 = memref.load %arg2[%c1, %12] : memref<3x4xf32, #tpu.memory_space<smem>>
    %c2 = arith.constant 2 : index
    %14 = arith.index_cast %9 : i32 to index
    %15 = memref.load %arg2[%c2, %14] : memref<3x4xf32, #tpu.memory_space<smem>>
    %16 = vector.broadcast %11 : f32 to vector<16x128xf32>
    %17 = arith.mulf %4, %16 : vector<16x128xf32>
    %18 = vector.broadcast %13 : f32 to vector<16x128xf32>
    %19 = arith.mulf %6, %18 : vector<16x128xf32>
    %20 = arith.addf %17, %19 : vector<16x128xf32>
    %21 = vector.broadcast %15 : f32 to vector<16x128xf32>
    %22 = arith.addf %20, %21 : vector<16x128xf32>
    %cst = arith.constant 0.000000e+00 : f32
    %23 = vector.broadcast %cst : f32 to vector<16x128xf32>
    %24 = arith.maximumf %22, %23 : vector<16x128xf32>
    %25 = arith.truncf %24 : vector<16x128xf32> to vector<16x128xbf16>
    %c0_8 = arith.constant 0 : index
    %c0_9 = arith.constant 0 : index
    %26 = vector.load %arg6[%c0_8, %c0_9] : memref<512x128xbf16, #tpu.memory_space<vmem>>, vector<128x128xbf16>
    %cst_10 = arith.constant dense<0.000000e+00> : vector<16x128xf32>
    %27 = tpu.matmul %25, %26, %cst_10 {dimension_numbers = #tpu.dot_dimension_numbers<[1], [0], [0], [1], [0, 0, 1, 1], [], []>} : vector<16x128xbf16>, vector<128x128xbf16>, vector<16x128xf32> -> vector<16x128xf32>
    %28 = arith.addf %7, %27 : vector<16x128xf32>
    %c4_i32_11 = arith.constant 4 : i32
    %29 = arith.muli %arg1, %c4_i32_11 : i32
    %c1_i32 = arith.constant 1 : i32
    %30 = arith.addi %29, %c1_i32 : i32
    %c0_12 = arith.constant 0 : index
    %31 = arith.index_cast %30 : i32 to index
    %32 = memref.load %arg2[%c0_12, %31] : memref<3x4xf32, #tpu.memory_space<smem>>
    %c1_13 = arith.constant 1 : index
    %33 = arith.index_cast %30 : i32 to index
    %34 = memref.load %arg2[%c1_13, %33] : memref<3x4xf32, #tpu.memory_space<smem>>
    %c2_14 = arith.constant 2 : index
    %35 = arith.index_cast %30 : i32 to index
    %36 = memref.load %arg2[%c2_14, %35] : memref<3x4xf32, #tpu.memory_space<smem>>
    %37 = vector.broadcast %32 : f32 to vector<16x128xf32>
    %38 = arith.mulf %4, %37 : vector<16x128xf32>
    %39 = vector.broadcast %34 : f32 to vector<16x128xf32>
    %40 = arith.mulf %6, %39 : vector<16x128xf32>
    %41 = arith.addf %38, %40 : vector<16x128xf32>
    %42 = vector.broadcast %36 : f32 to vector<16x128xf32>
    %43 = arith.addf %41, %42 : vector<16x128xf32>
    %cst_15 = arith.constant 0.000000e+00 : f32
    %44 = vector.broadcast %cst_15 : f32 to vector<16x128xf32>
    %45 = arith.maximumf %43, %44 : vector<16x128xf32>
    %46 = arith.truncf %45 : vector<16x128xf32> to vector<16x128xbf16>
    %c128 = arith.constant 128 : index
    %c0_16 = arith.constant 0 : index
    %47 = vector.load %arg6[%c128, %c0_16] : memref<512x128xbf16, #tpu.memory_space<vmem>>, vector<128x128xbf16>
    %cst_17 = arith.constant dense<0.000000e+00> : vector<16x128xf32>
    %48 = tpu.matmul %46, %47, %cst_17 {dimension_numbers = #tpu.dot_dimension_numbers<[1], [0], [0], [1], [0, 0, 1, 1], [], []>} : vector<16x128xbf16>, vector<128x128xbf16>, vector<16x128xf32> -> vector<16x128xf32>
    %49 = arith.addf %28, %48 : vector<16x128xf32>
    %c4_i32_18 = arith.constant 4 : i32
    %50 = arith.muli %arg1, %c4_i32_18 : i32
    %c2_i32 = arith.constant 2 : i32
    %51 = arith.addi %50, %c2_i32 : i32
    %c0_19 = arith.constant 0 : index
    %52 = arith.index_cast %51 : i32 to index
    %53 = memref.load %arg2[%c0_19, %52] : memref<3x4xf32, #tpu.memory_space<smem>>
    %c1_20 = arith.constant 1 : index
    %54 = arith.index_cast %51 : i32 to index
    %55 = memref.load %arg2[%c1_20, %54] : memref<3x4xf32, #tpu.memory_space<smem>>
    %c2_21 = arith.constant 2 : index
    %56 = arith.index_cast %51 : i32 to index
    %57 = memref.load %arg2[%c2_21, %56] : memref<3x4xf32, #tpu.memory_space<smem>>
    %58 = vector.broadcast %53 : f32 to vector<16x128xf32>
    %59 = arith.mulf %4, %58 : vector<16x128xf32>
    %60 = vector.broadcast %55 : f32 to vector<16x128xf32>
    %61 = arith.mulf %6, %60 : vector<16x128xf32>
    %62 = arith.addf %59, %61 : vector<16x128xf32>
    %63 = vector.broadcast %57 : f32 to vector<16x128xf32>
    %64 = arith.addf %62, %63 : vector<16x128xf32>
    %cst_22 = arith.constant 0.000000e+00 : f32
    %65 = vector.broadcast %cst_22 : f32 to vector<16x128xf32>
    %66 = arith.maximumf %64, %65 : vector<16x128xf32>
    %67 = arith.truncf %66 : vector<16x128xf32> to vector<16x128xbf16>
    %c256 = arith.constant 256 : index
    %c0_23 = arith.constant 0 : index
    %68 = vector.load %arg6[%c256, %c0_23] : memref<512x128xbf16, #tpu.memory_space<vmem>>, vector<128x128xbf16>
    %cst_24 = arith.constant dense<0.000000e+00> : vector<16x128xf32>
    %69 = tpu.matmul %67, %68, %cst_24 {dimension_numbers = #tpu.dot_dimension_numbers<[1], [0], [0], [1], [0, 0, 1, 1], [], []>} : vector<16x128xbf16>, vector<128x128xbf16>, vector<16x128xf32> -> vector<16x128xf32>
    %70 = arith.addf %49, %69 : vector<16x128xf32>
    %c4_i32_25 = arith.constant 4 : i32
    %71 = arith.muli %arg1, %c4_i32_25 : i32
    %c3_i32 = arith.constant 3 : i32
    %72 = arith.addi %71, %c3_i32 : i32
    %c0_26 = arith.constant 0 : index
    %73 = arith.index_cast %72 : i32 to index
    %74 = memref.load %arg2[%c0_26, %73] : memref<3x4xf32, #tpu.memory_space<smem>>
    %c1_27 = arith.constant 1 : index
    %75 = arith.index_cast %72 : i32 to index
    %76 = memref.load %arg2[%c1_27, %75] : memref<3x4xf32, #tpu.memory_space<smem>>
    %c2_28 = arith.constant 2 : index
    %77 = arith.index_cast %72 : i32 to index
    %78 = memref.load %arg2[%c2_28, %77] : memref<3x4xf32, #tpu.memory_space<smem>>
    %79 = vector.broadcast %74 : f32 to vector<16x128xf32>
    %80 = arith.mulf %4, %79 : vector<16x128xf32>
    %81 = vector.broadcast %76 : f32 to vector<16x128xf32>
    %82 = arith.mulf %6, %81 : vector<16x128xf32>
    %83 = arith.addf %80, %82 : vector<16x128xf32>
    %84 = vector.broadcast %78 : f32 to vector<16x128xf32>
    %85 = arith.addf %83, %84 : vector<16x128xf32>
    %cst_29 = arith.constant 0.000000e+00 : f32
    %86 = vector.broadcast %cst_29 : f32 to vector<16x128xf32>
    %87 = arith.maximumf %85, %86 : vector<16x128xf32>
    %88 = arith.truncf %87 : vector<16x128xf32> to vector<16x128xbf16>
    %c384 = arith.constant 384 : index
    %c0_30 = arith.constant 0 : index
    %89 = vector.load %arg6[%c384, %c0_30] : memref<512x128xbf16, #tpu.memory_space<vmem>>, vector<128x128xbf16>
    %cst_31 = arith.constant dense<0.000000e+00> : vector<16x128xf32>
    %90 = tpu.matmul %88, %89, %cst_31 {dimension_numbers = #tpu.dot_dimension_numbers<[1], [0], [0], [1], [0, 0, 1, 1], [], []>} : vector<16x128xbf16>, vector<128x128xbf16>, vector<16x128xf32> -> vector<16x128xf32>
    %91 = arith.addf %70, %90 : vector<16x128xf32>
    %c0_32 = arith.constant 0 : index
    %c0_33 = arith.constant 0 : index
    %92 = vector.load %arg9[%c0_32, %c0_33] : memref<16x128xf32, #tpu.memory_space<vmem>>, vector<16x128xf32>
    tpu.vector_store %arg9[%c0_32, %c0_33], %91 {strides = array<i32>} : memref<16x128xf32, #tpu.memory_space<vmem>>, vector<16x128xf32>,
    %c0_i32_34 = arith.constant 0 : i32
    %93 = arith.cmpi eq, %arg1, %c0_i32_34 : i32
    %94 = arith.extui %93 : i1 to i32
    %c0_i32_35 = arith.constant 0 : i32
    %95 = arith.cmpi ne, %94, %c0_i32_35 : i32
    scf.if %95 {
      %c0_36 = arith.constant 0 : index
      %c0_37 = arith.constant 0 : index
      %96 = vector.load %arg9[%c0_36, %c0_37] : memref<16x128xf32, #tpu.memory_space<vmem>>, vector<16x128xf32>
      %c0_38 = arith.constant 0 : index
      %c0_39 = arith.constant 0 : index
      %97 = vector.load %arg7[%c0_38, %c0_39] : memref<2x128xf32, #tpu.memory_space<vmem>>, vector<1x128xf32>
      %98 = vector.broadcast %97 : vector<1x128xf32> to vector<16x128xf32>
      %99 = arith.mulf %96, %98 : vector<16x128xf32>
      %c1_40 = arith.constant 1 : index
      %c0_41 = arith.constant 0 : index
      %100 = vector.load %arg7[%c1_40, %c0_41] : memref<2x128xf32, #tpu.memory_space<vmem>>, vector<1x128xf32>
      %101 = vector.broadcast %100 : vector<1x128xf32> to vector<16x128xf32>
      %102 = arith.addf %99, %101 : vector<16x128xf32>
      %cst_42 = arith.constant 0.000000e+00 : f32
      %103 = vector.broadcast %cst_42 : f32 to vector<16x128xf32>
      %104 = arith.maximumf %102, %103 : vector<16x128xf32>
      %c0_43 = arith.constant 0 : index
      %c0_44 = arith.constant 0 : index
      %105 = vector.load %arg5[%c0_43, %c0_44] : memref<16x128xbf16, #tpu.memory_space<vmem>>, vector<16x128xbf16>
      %106 = arith.extf %105 : vector<16x128xbf16> to vector<16x128xf32>
      %107 = arith.mulf %104, %106 : vector<16x128xf32>
      %cst_45 = arith.constant dense<0.000000e+00> : vector<16xf32>
      %108 = vector.multi_reduction <add>, %107, %cst_45 [1] : vector<16x128xf32> to vector<16xf32>
      %109 = vector.shape_cast %108 : vector<16xf32> to vector<16x1xf32>
      %c0_46 = arith.constant 0 : index
      %c0_47 = arith.constant 0 : index
      %110 = vector.load %arg8[%c0_46, %c0_47] : memref<16x1xf32, #tpu.memory_space<vmem>>, vector<16x1xf32>
      tpu.vector_store %arg8[%c0_46, %c0_47], %109 {strides = array<i32>} : memref<16x1xf32, #tpu.memory_space<vmem>>, vector<16x1xf32>,
    } else {
    }
    return
  }
  func.func @transform_0(%arg0: i32, %arg1: i32, %arg2: memref<3x4xf32, #tpu.memory_space<smem>>) -> (i32, i32) {
    %c0_i32 = arith.constant 0 : i32
    %c0_i32_0 = arith.constant 0 : i32
    return %arg0, %c0_i32 : i32, i32
  }
  func.func @transform_1(%arg0: i32, %arg1: i32, %arg2: memref<3x4xf32, #tpu.memory_space<smem>>) -> (i32, i32) {
    %c0_i32 = arith.constant 0 : i32
    %c0_i32_0 = arith.constant 0 : i32
    return %arg0, %c0_i32 : i32, i32
  }
  func.func @transform_2(%arg0: i32, %arg1: i32, %arg2: memref<3x4xf32, #tpu.memory_space<smem>>) -> (i32, i32) {
    %c0_i32 = arith.constant 0 : i32
    %c0_i32_0 = arith.constant 0 : i32
    return %arg0, %c0_i32 : i32, i32
  }
  func.func @transform_3(%arg0: i32, %arg1: i32, %arg2: memref<3x4xf32, #tpu.memory_space<smem>>) -> (i32, i32) {
    %c0_i32 = arith.constant 0 : i32
    %c0_i32_0 = arith.constant 0 : i32
    return %arg1, %c0_i32 : i32, i32
  }
  func.func @transform_4(%arg0: i32, %arg1: i32, %arg2: memref<3x4xf32, #tpu.memory_space<smem>>) -> (i32, i32) {
    %c0_i32 = arith.constant 0 : i32
    %c0_i32_0 = arith.constant 0 : i32
    %c0_i32_1 = arith.constant 0 : i32
    return %c0_i32, %c0_i32_0 : i32, i32
  }
  func.func @transform_5(%arg0: i32, %arg1: i32, %arg2: memref<3x4xf32, #tpu.memory_space<smem>>) -> (i32, i32) {
    %c0_i32 = arith.constant 0 : i32
    %c0_i32_0 = arith.constant 0 : i32
    return %arg0, %c0_i32 : i32, i32
  }
}

</mosaic_0001>

<bundles_post_ra>
// kernel: tpu_custom_call.1
= control target key start
LH: loop header
LB: loop body
LE: loop exit
PB: predicated region body
PF: predicated region fallthrough
CT: control target
= control target key end

     0   :  { %s2024_s0 = inlined_call_operand.hbm [shape: f32[3,4], index: 0, kind: input, shape index: {}]   ;;  %s2025_s1 = inlined_call_operand.hbm [shape: bf16[32,128], index: 1, kind: input, shape index: {}]   ;;  %s2026_s2 = inlined_call_operand.hbm [shape: bf16[32,128], index: 2, kind: input, shape index: {}]   ;;  %s2027_s3 = inlined_call_operand.hbm [shape: bf16[32,128], index: 3, kind: input, shape index: {}]   ;;  %s2028_s4 = inlined_call_operand.hbm [shape: bf16[512,128], index: 4, kind: input, shape index: {}]   ;;  %s2029_s5 = inlined_call_operand.vmem [shape: f32[2,128], index: 5, kind: input, shape index: {}]   ;;  %s2030_s6 = inlined_call_operand.vmem [shape: f32[32,1], index: 6, kind: output, shape index: {}]  }
   0x1   :  { %2047 = sst [smem:[#allocation19_spill]] %s2026_s2  ;;  %s1413_s23 = scalar_lea.hbm %s2024_s0, 64 }
   0x2   :  { %p1414_p0 = scmp.ne.s32.totalorder %s2024_s0, %s1413_s23  ;;  %p1417_p1 = scmp.lt.u32.totalorder %s1413_s23, %s2024_s0 }
   0x4   :  { %p1419_p2 = pnand %p1417_p1, %p1414_p0 }
   0x6   :  { %1422 = shalt.err (!%p1419_p2)  }
   0x7   :  { %s1603_s28 = smov [#allocation4]  }
   0x8   :  { %12 = dma.hbm_to_smem %s2024_s0, 64, %s1603_s28, [#allocation3] }
   0x9   :  { %1565 = dma.done.wait [#allocation3], 64 }
   0xa   :  { %1566 = vsyncadd [#allocation3], 4294967232 }
   0xb   :  { %14 = sfence }
   0xc   :  { %15 = vsyncpa [#allocation6], 0 }
   0xd   :  { %17 = vsyncpa [#allocation6 + $0x1], 0 }
   0xe   :  { %18 = vsyncpa [#allocation8], 0 }
   0xf   :  { %20 = vsyncpa [#allocation8 + $0x1], 0 }
  0x10   :  { %21 = vsyncpa [#allocation11], 0  ;;  %s1659_s7 = smov 0   ;;  %s1661_s8 = smov 0  }
  0x11   :  { %s1663_s9 = smov 0   ;;  %s1665_s10 = smov 0  }
  0x12   :  { %s1667_s11 = smov 0   ;;  %s1669_s12 = smov 0  }
  0x13 LB: > { %2048 = sst [smem:[#allocation16_spill]] %s1597_s11  ;;  %s39_s0 = sadd.s32 1, %s1597_s11  ;;  %s1601_s12 = sphi %s1669_s12, %s27_s12   ;;  %s1597_s11 = sphi %s1667_s11, %s2069_s11   ;;  %s1593_s10 = sphi %s1665_s10, %s2068_s10   ;;  %s1589_s9 = sphi %s1663_s9, %s2072_s9   ;;  %s1585_s8 = sphi %s1661_s8, %s2071_s8   ;;  %s1581_s7 = sphi %s1659_s7, %s2070_s7  }
  0x14   : > { %s46_s13 = sadd.s32 1, %s1589_s9  ;;  %p41_p3 = scmp.ge.s32.totalorder %s39_s0, 2 }
  0x15   : > { %p53_p4 = scmp.ne.s32.totalorder %s1589_s9, %s1585_s8  ;;  %p54_p5 = scmp.eq.s32.totalorder %s1601_s12, 0 }
  0x16   : > { %s2074_s0 = smov (%p41_p3, %s39_s0), 0  ;;  %p1325_p8 = scmp.lt.s32.totalorder %s1601_s12, 2 }
  0x17   : > { %2049 = sst [smem:[#allocation17_spill]] %s2074_s0  ;;  %p55_p6 = por %p54_p5, %p53_p4 }
  0x18   : > { %s43_s14 = ssub.s32 %s1597_s11, %s2074_s0  ;;  %s2032_s15 = sand.u32 1, %s1589_s9  }
  0x19   : > { %p44_p7 = scmp.eq.s32.totalorder %s43_s14, 0  ;;  %s1701_s16 = sshll.u32 %s1597_s11, 7 }
  0x1a   : > { %s1708_s18 = sshll.u32 %s2032_s15, 3  ;;  %p1710_p9 = pnand %p1325_p8, %p55_p6 }
  0x1b   : > { %s1704_s17 = scalar_select %p44_p7, %s1589_s9, %s46_s13  }
  0x1c   : > { %s2051_s19 = scalar_select %p1710_p9, 1, 0 }
  0x1d   : > { %2050 = sst [smem:[#allocation18_spill]] %s1704_s17  ;;  %s248_s20 = sand.u32 1, %s1601_s12  }
  0x1e   : > { %s2052_s2 = sld [smem:[#allocation19_spill]]  ;;  %s252_s24 = scalar_lea.vmem [#allocation7], %s1708_s18 }
  0x1f   : > { %s259_s25 = sshll.u32 %s252_s24, 4  ;;  %s1724_s26 = scalar_lea.sflag [#allocation8], %s248_s20  ;;  %s1722_s25 = int_to_ptr.vmem [resolvable:$true] %s259_s25 }
  0x20   : > { %p1730_p11 = pneg %p1710_p9 }
  0x22   : > { %s2053_s28 = scalar_select %p1730_p11, 1, 0 }
  0x24   : > { %s1719_s23 = scalar_lea.hbm %s2052_s2, %s1701_s16  ;;  %s1428_s13 = scalar_lea.hbm %s2052_s2, 256 }
  0x25   : > { %s1423_s27 = scalar_lea.hbm %s1719_s23, 128  ;;  %p1429_p0 = scmp.lt.u32.totalorder %s1719_s23, %s2052_s2 }
  0x26   : > { %p1424_p10 = scmp.ne.s32.totalorder %s1719_s23, %s1423_s27  ;;  %p1430_p1 = scmp.lt.u32.totalorder %s1428_s13, %s1423_s27 }
  0x27   : > { %p1432_p3 = scmp.lt.u32.totalorder %s1423_s27, %s1719_s23 }
  0x28   : > { %p1426_p12 = pnand %p1730_p11, %p1424_p10  ;;  %p1431_p2 = por %p1430_p1, %p1429_p0 }
  0x2a   : > { %p1427_p13 = pneg %p1426_p12  ;;  %p1433_p4 = por %p1432_p3, %p1431_p2 }
  0x2c   : > { %p1434_p5 = pnand %p1433_p4, %p1427_p13 }
  0x2e   : > { %1437 = shalt.err (!%p1434_p5)
}
  0x2f   : > { %s1438_s20 = scalar_lea.vmem %s1722_s25, 128  ;;  %s1604_s22 = smov [#allocation7]  }
  0x30   : > { %p1439_p6 = scmp.ne.s32.totalorder %s1722_s25, %s1438_s20  ;;  %s1443_s24 = sshll.u32 %s1604_s22, 4  ;;  %s1444_s24 = int_to_ptr.vmem [resolvable:$false] %s1443_s24 }
  0x31   : > { %s1445_s29 = scalar_lea.vmem %s1444_s24, 256  ;;  %p1446_p10 = scmp.lt.s32.totalorder %s1722_s25, %s1444_s24 }
  0x32   : > { %p1441_p7 = pnand %p1439_p6, %p1730_p11  ;;  %p1447_p12 = scmp.lt.s32.totalorder %s1445_s29, %s1438_s20 }
  0x34   : > { %p1442_p8 = pneg %p1441_p7  ;;  %p1448_p0 = por %p1447_p12, %p1446_p10 }
  0x36   : > { %p1449_p1 = pnand %p1448_p0, %p1442_p8 }
  0x38   : > { %1452 = shalt.err (!%p1449_p1)
}
  0x39   : > { %s2033_s27 = smov 64   ;;  %s2035_s30 = smov 4  }
  0x3a   : > { %1320 = dma.hbm_to_vmem [thread:$0]  (!%p1710_p9), %s1719_s23, 128, %s1722_s25, %s1724_s26, %s2033_s27, %s2033_s27, %s2035_s30  }
  0x3b   : > { %s2031_s13 = sadd.s32 4294967295, %s1601_s12   ;;  %p59_p13 = scmp.ne.s32.totalorder %s1585_s8, %s1581_s7 }
  0x3c   : > { %p1762_p2 = scmp.eq.s32.totalorder %s2031_s13, 0  ;;  %p1093_p3 = scmp.ge.s32.totalorder %s1601_s12, 1 }
  0x3d   : > { %p195_p4 = scmp.lt.s32.totalorder %s1601_s12, 3  ;;  %s1607_s7 = smov [#allocation10]  }
  0x3e   : > { %s2054_s14 = scalar_select %p1762_p2, 1, 0 }
  0x3f   : > { %p1770_p5 = por %p1762_p2, %p59_p13  ;;  %p1774_p6 = pnand %p1093_p3, %p195_p4 }
  0x40   : > { %s210_s23 = sshll.u32 %s1607_s7, 4  ;;  %s1784_s24 = scalar_lea.hbm %s2025_s1, %s1701_s16  ;;  %s211_s23 = int_to_ptr.vmem [resolvable:$true] %s210_s23 }
  0x41   : > { %s2055_s21 = scalar_select %p1770_p5, 1, 0 }
  0x42   : > { %s2056_s20 = scalar_select %p1774_p6, 1, 0 }
  0x43   : > { %p1310_p7 = pneg %p1774_p6  ;;  %s231_s13 = scalar_lea.vmem [#allocation5], %s1708_s18 }
  0x44   : > { %s238_s15 = sshll.u32 %s231_s13, 4  ;;  %s1799_s30 = scalar_lea.hbm %s2027_s3, %s1701_s16  ;;  %s1793_s15 = int_to_ptr.vmem [resolvable:$true] %s238_s15 }
  0x45   : > { %p1788_p8 = pnand %p1310_p7, %p1762_p2  ;;  %s1453_s25 = scalar_lea.hbm %s2028_s4, 4096 }
  0x46   : > { %p1454_p10 = scmp.ne.s32.totalorder %s2028_s4, %s1453_s25  ;;  %p1460_p13 = scmp.lt.u32.totalorder %s1453_s25, %s2028_s4 }
  0x47   : > { %p1455_p12 = pneg %p1788_p8 }
  0x49   : > { %p1456_p0 = pnand %p1455_p12, %p1454_p10 }
  0x4b   : > { %p1457_p1 = pneg %p1456_p0 }
  0x4d   : > { %p1462_p3 = pnand %p1460_p13, %p1457_p1 }
  0x4f   : > { %1465 = shalt.err (!%p1462_p3)
}
  0x50   : > { %s1466_s16 = scalar_lea.vmem %s211_s23, 4096  ;;  %p1474_p5 = scmp.lt.s32.totalorder %s211_s23, %s211_s23 }
  0x51   : > { %p1467_p4 = scmp.ne.s32.totalorder %s211_s23, %s1466_s16  ;;  %p1475_p6 = scmp.lt.s32.totalorder %s1466_s16, %s1466_s16 }
  0x53   : > { %p1469_p7 = pnand %p1467_p4, %p1455_p12  ;;  %p1476_p9 = por %p1475_p6, %p1474_p5 }
  0x55   : > { %p1470_p2 = pneg %p1469_p7 }
  0x57   : > { %p1477_p11 = pnand %p1476_p9, %p1470_p2 }
  0x59   : > { %1480 = shalt.err (!%p1477_p11)
}
  0x5a   : > { %s2058_s2 = smov 4   ;;  %s2059_s11 = smov 64  }
  0x5b   : > { %1313 = dma.hbm_to_vmem [thread:$0]  (!%p1788_p8), %s2028_s4, 4096, %s211_s23, [#allocation11], %s2059_s11, %s2059_s11, %s2058_s2  }
  0x5c   : > { %s2060_s17 = sand.u32 1, %s1589_s9   ;;  %s1481_s25 = scalar_lea.hbm %s1784_s24, 128 }
  0x5d   : > { %s1822_s7 = scalar_lea.sflag [#allocation6], %s2060_s17  ;;  %p1482_p9 = scmp.ne.s32.totalorder %s1784_s24, %s1481_s25 }
  0x5e   : > { %p2061_p11 = scmp.ne.s32.totalorder %s2053_s28, 0  ;;  %s1486_s13 = scalar_lea.hbm %s2025_s1, 256 }
  0x5f   : > { %p1487_p6 = scmp.lt.u32.totalorder %s1784_s24, %s2025_s1  ;;  %p1488_p10 = scmp.lt.u32.totalorder %s1486_s13, %s1481_s25 }
  0x60   : > { %p1484_p2 = pnand %p1482_p9, %p2061_p11  ;;  %p1490_p0 = scmp.lt.u32.totalorder %s1481_s25, %s1784_s24 }
  0x61   : > { %p1489_p12 = por %p1488_p10, %p1487_p6 }
  0x62   : > { %p1485_p5 = pneg %p1484_p2 }
  0x63   : > { %p1491_p8 = por %p1490_p0, %p1489_p12 }
  0x65   : > { %p1492_p1 = pnand %p1491_p8, %p1485_p5 }
  0x67   : > { %1495 = shalt.err (!%p1492_p1)
}
  0x68   : > { %s1496_s23 = scalar_lea.vmem %s1793_s15, 128  ;;  %s1608_s27 = smov [#allocation5]  }
  0x69   : > { %p1497_p13 = scmp.ne.s32.totalorder %s1793_s15, %s1496_s23  ;;  %s1501_s17 = sshll.u32 %s1608_s27, 4  ;;  %s1502_s17 = int_to_ptr.vmem [resolvable:$false] %s1501_s17 }
  0x6a   : > { %s1503_s29 = scalar_lea.vmem %s1502_s17, 256  ;;  %p1504_p7 = scmp.lt.s32.totalorder %s1793_s15, %s1502_s17 }
  0x6b   : > { %p1499_p3 = pnand %p1497_p13, %p2061_p11  ;;  %p1505_p9 = scmp.lt.s32.totalorder %s1503_s29, %s1496_s23 }
  0x6d   : > { %p1500_p4 = pneg %p1499_p3  ;;  %p1506_p2 = por %p1505_p9, %p1504_p7 }
  0x6f   : > { %p1507_p6 = pnand %p1506_p2, %p1500_p4 }
  0x71   : > { %1510 = shalt.err (!%p1507_p6)
}
  0x72   : > { %p2062_p5 = scmp.ne.s32.totalorder %s2051_s19, 0  ;;  %s273_s25 = scalar_lea.vmem [#allocation9], %s1708_s18 }
  0x73   : > { %s280_s22 = sshll.u32 %s273_s25, 4  ;;  %s1511_s13 = scalar_lea.hbm %s1799_s30, 128  ;;  %s1850_s22 = int_to_ptr.vmem [resolvable:$true] %s280_s22 }
  0x74   : > { %1317 = dma.hbm_to_vmem [thread:$0]  (!%p2062_p5), %s1784_s24, 128, %s1793_s15, %s1822_s7, %s2059_s11, %s2059_s11, %s2058_s2  }
  0x75   : > { %p1512_p10 = scmp.ne.s32.totalorder %s1799_s30, %s1511_s13  ;;  %s1516_s23 = scalar_lea.hbm %s2027_s3, 256 }
  0x76   : > { %p1517_p8 = scmp.lt.u32.totalorder %s1799_s30, %s2027_s3  ;;  %p1518_p1 = scmp.lt.u32.totalorder %s1516_s23, %s1511_s13 }
  0x77   : > { %p1514_p12 = pnand %p1512_p10, %p2061_p11  ;;  %p1520_p3 = scmp.lt.u32.totalorder %s1511_s13, %s1799_s30 }
  0x78   : > { %p1519_p13 = por %p1518_p1, %p1517_p8 }
  0x79   : > { %p1515_p0 = pneg %p1514_p12 }
  0x7a   : > { %p1521_p4 = por %p1520_p3, %p1519_p13 }
  0x7c   : > { %p1522_p7 = pnand %p1521_p4, %p1515_p0 }
  0x7e   : > { %1525 = shalt.err (!%p1522_p7)
}
  0x7f   : > { %s1526_s15 = scalar_lea.vmem %s1850_s22, 128  ;;  %s1609_s18 = smov [#allocation9]  }
  0x80   : > { %p1527_p9 = scmp.ne.s32.totalorder %s1850_s22, %s1526_s15  ;;  %s1531_s24 = sshll.u32 %s1609_s18, 4  ;;  %s1532_s24 = int_to_ptr.vmem [resolvable:$false] %s1531_s24 }
  0x81   : > { %s1533_s7 = scalar_lea.vmem %s1532_s24, 256  ;;  %p1534_p10 = scmp.lt.s32.totalorder %s1850_s22, %s1532_s24 }
  0x82   : > { %p1529_p2 = pnand %p1527_p9, %p2061_p11  ;;  %p1535_p12 = scmp.lt.s32.totalorder %s1533_s7, %s1526_s15 }
  0x84   : > { %p1530_p6 = pneg %p1529_p2  ;;  %p1536_p8 = por %p1535_p12, %p1534_p10 }
  0x86   : > { %p1537_p1 = pnand %p1536_p8, %p1530_p6 }
  0x88   : > { %1540 = shalt.err (!%p1537_p1)
}
  0x89   : > { %1323 = dma.hbm_to_vmem [thread:$0]  (!%p2062_p5), %s1799_s30, 128, %s1850_s22, %s1724_s26, %s2059_s11, %s2059_s11, %s2058_s2  }
  0x8a   : > { %p2063_p11 = scmp.ne.s32.totalorder %s2056_s20, 0 }
  0x8b   : > { %s294_s28 = sand.u32 (!%p2063_p11), 1, %s1585_s8   ;;  %p2064_p0 = scmp.ne.s32.totalorder (!%p2063_p11), %s2055_s21, 0 }
  0x8c   : > { %292 = sbr.rel (%p2063_p11) target bundleno = 590 (0x24e), region = 40  ;;  %s1880_s29 = sshll.u32 (!%p2063_p11), %s294_s28, 3 }
  0x8d   : > { %s295_s25 = scalar_lea.sflag (!%p2063_p11), [#allocation6], %s294_s28  ;;  %s298_s13 = scalar_lea.vmem (!%p2063_p11), [#allocation5], %s1880_s29 }
  0x93   : > { %1568 = dma.done.wait (%p2064_p0), %s295_s25, 128  }
  0x94   : > { %1570 = vsyncadd (%p2064_p0), %s295_s25, 4294967168  ;;  %s2065_s19 = sadd.s32 4294967295, %s1601_s12   ;;  %s307_s20 = scalar_lea.vmem [#allocation7], %s1880_s29 }
  0x95   : > { %s303_s26 = sand.u32 1, %s2065_s19  }
  0x96   : > { %s304_s30 = scalar_lea.sflag [#allocation8], %s303_s26 }
  0x97   : > { %1572 = dma.done.wait (%p2064_p0), %s304_s30, 256  }
  0x98   : > { %1574 = vsyncadd (%p2064_p0), %s304_s30, 4294967040  ;;  %s316_s2 = scalar_lea.vmem [#allocation9], %s1880_s29  ;;  %p2066_p5 = scmp.ne.s32.totalorder %s2054_s14, 0 }
  0x9a   : > { %1576 = dma.done.wait (%p2066_p5), [#allocation11], 4096  }
  0x9b   : > { %1578 = vsyncadd (%p2066_p5), [#allocation11], 4294963200  ;;  %v1610_v0 = vmov 0.0   ;;  %vm1611_vm0 = vmmov 0   ;;  %s1905_s21 = sld [smem:[#allocation4]]  ;;  %v1381_v1 = vld [vmem:[#allocation10] sm:$0xff]  }
  0x9c   : > { %1210 = vmatprep.subr.bf16.mxu1 %v1610_v0  ;;  %1250 = vmatprep.subr.bf16.mxu0 %v1610_v0  ;;  %v1382_v2 = vld [vmem:[#allocation10 + $0x80] sm:$0xff]   ;;  %v1383_v3 = vld [vmem:[#allocation10 + $0x8] sm:$0xff]   ;;  %s1909_s14 = sld [smem:[#allocation4 + $0x80]]  ;;  %s1911_s11 = sld [smem:[#allocation4 + $0x2]]  ;;  %v1385_v5 = vld [vmem:[#allocation10 + $0x10] sm:$0xff]   ;;  %vm957_vm1 = vcmask 7168  }
  0x9d   : > { %1226 = vmatprep.mubr.msk.bf16.mxu1 %vm1611_vm0, %v1610_v0  ;;  %1266 = vmatprep.mubr.msk.bf16.mxu0 %vm1611_vm0, %v1610_v0  ;;  %v1384_v4 = vld [vmem:[#allocation10 + $0x88] sm:$0xff]   ;;  %v1386_v6 = vld [vmem:[#allocation10 + $0x90] sm:$0xff]   ;;  %s1915_s22 = sld [smem:[#allocation4 + $0x82]]  ;;  %s1917_s16 = sld [smem:[#allocation4 + $0x100]]  ;;  %v1387_v7 = vld [vmem:[#allocation10 + $0x18] sm:$0xff]  }
  0x9e   : > { %1211 = vmatpush3.bf16.msra.mxu1 %v1381_v1  ;;  %1251 = vmatpush3.bf16.msra.mxu0 %v1382_v2  ;;  %v1388_v8 = vld [vmem:[#allocation10 + $0x98] sm:$0xff]   ;;  %s1921_s0 = sld [smem:[#allocation4 + $0x102]]  ;;  %v1389_v9 = vld [vmem:[#allocation10 + $0x20] sm:$0xff]   ;;  %v1391_v21 = vld [vmem:[#allocation10 + $0x28] sm:$0xff]   ;;  %s1122_s23 = sld [smem:[#allocation4 + $0x1]] }
  0x9f   : > { %1212 = vmatprep.subr.bf16.mxu1 %v1610_v0  ;;  %1252 = vmatprep.subr.bf16.mxu0 %v1610_v0  ;;  %v1390_v10 = vld [vmem:[#allocation10 + $0xa0] sm:$0xff]   ;;  %v1163_v13 = vld [vmem:[%s298_s13] sm:$0xff]   ;;  %v1392_v22 = vld [vmem:[#allocation10 + $0xa8] sm:$0xff]   ;;  %s1123_s27 = sld [smem:[#allocation4 + $0x81]]  ;;  %s1144_s17 = sld [smem:[#allocation4 + $0x3]] }
  0xa0   : > { %v1167_v14 = vld [vmem:[%s307_s20] sm:$0xff]   ;;  %v1933_v17 = vunpack.c.l.bf16 %v1163_v13  ;;  %v1935_v18 = vunpack.c.h.bf16 %v1163_v13  ;;  %v1393_v34 = vld [vmem:[#allocation10 + $0x30] sm:$0xff]   ;;  %v1395_v44 = vld [vmem:[#allocation10 + $0x38] sm:$0xff]   ;;  %s1960_s15 = sld [smem:[#allocation4 + $0x83]]  ;;  %s1969_s18 = sld [smem:[#allocation4 + $0x101]] }
  0xa1   : > { %v398_v11 = vstv %s1905_s21  ;;  %v1937_v19 = vunpack.c.l.bf16 %v1167_v14  ;;  %v1939_v20 = vunpack.c.h.bf16 %v1167_v14  ;;  %v1394_v37 = vld [vmem:[#allocation10 + $0xb0] sm:$0xff]   ;;  %v1396_v47 = vld [vmem:[#allocation10 + $0xb8] sm:$0xff]   ;;  %v1397_v50 = vld [vmem:[#allocation10 + $0x40] sm:$0xff]   ;;  %s1972_s24 = sld [smem:[#allocation4 + $0x103]]  ;;  %s1110_s19 = sshll.u32 %s1593_s10, 1 }
  0xa2   : > { %1213 = vmatpush3.bf16.msra.mxu1 %v1383_v3  ;;  %1253 = vmatpush3.bf16.msra.mxu0 %v1384_v4  ;;  %v401_v12 = vstv %s1909_s14  ;;  %v668_v15 = vstv %s1911_s11  ;;  %v399_v23 = vmul.f32 %v1933_v17, %v398_v11  ;;  %v400_v24 = vmul.f32 %v1935_v18, %v398_v11  ;;  %v1398_v52 = vld [vmem:[#allocation10 + $0xc0] sm:$0xff]   ;;  %v1399_v53 = vld [vmem:[#allocation10 + $0x48] sm:$0xff]   ;;  %v1401_v55 = vld [vmem:[#allocation10 + $0x50] sm:$0xff]   ;;  %p362_p13 = scmp.lt.s32.totalorder %s1110_s19, 3 }
  0xa3   : > { %1214 = vmatprep.subr.bf16.mxu1 %v1610_v0  ;;  %1254 = vmatprep.subr.bf16.mxu0 %v1610_v0  ;;  %v671_v16 = vstv %s1915_s22  ;;  %v402_v25 = vmul.f32 %v1937_v19, %v401_v12  ;;  %v406_v26 = vstv %s1917_s16  ;;  %v403_v27 = vmul.f32 %v1939_v20, %v401_v12  ;;  %v1400_v54 = vld [vmem:[#allocation10 + $0xc8] sm:$0xff]   ;;  %v1402_v56 = vld [vmem:[#allocation10 + $0xd0] sm:$0xff]   ;;  %v1403_v57 = vld [vmem:[#allocation10 + $0x58] sm:$0xff]  }
  0xa4   : > { %v669_v28 = vmul.f32 %v1933_v17, %v668_v15  ;;  %v670_v29 = vmul.f32 %v1935_v18, %v668_v15  ;;  %v672_v30 = vmul.f32 %v1937_v19, %v671_v16  ;;  %v673_v32 = vmul.f32 %v1939_v20, %v671_v16  ;;  %v1404_v60 = vld [vmem:[#allocation10 + $0xd8] sm:$0xff]   ;;  %v1405_v4 = vld [vmem:[#allocation10 + $0x60] sm:$0xff]   ;;  %v1407_v12 = vld [vmem:[#allocation10 + $0x68] sm:$0xff]   ;;  %s2076_s19 = smov (!%p362_p13, %s1110_s19), 3 }
  0xa5   : > { %v404_v31 = vadd.f32 %v402_v25, %v399_v23  ;;  %v676_v33 = vstv %s1921_s0  ;;  %v405_v35 = vadd.f32 %v403_v27, %v400_v24  ;;  %v533_v58 = vstv %s1122_s23  ;;  %v1408_v16 = vld [vmem:[#allocation10 + $0xe8] sm:$0xff]   ;;  %v1410_v23 = vld [vmem:[#allocation10 + $0xf0] sm:$0xff]   ;;  %s1111_s29 = sshll.u32 %s2076_s19, 3 }
  0xa6   : > { %1215 = vmatpush3.bf16.msra.mxu1 %v1385_v5  ;;  %1255 = vmatpush3.bf16.msra.mxu0 %v1386_v6  ;;  %v674_v36 = vadd.f32 %v672_v30, %v669_v28  ;;  %v675_v39 = vadd.f32 %v673_v32, %v670_v29  ;;  %v536_v59 = vstv %s1123_s27  ;;  %v803_v61 = vstv %s1144_s17  ;;  %v1412_v29 = vld [vmem:[#allocation10 + $0xf8] sm:$0xff]   ;;  %s365_s20 = scalar_lea.vmem %s2030_s6, %s1111_s29 }
  0xa7   : > { %1216 = vmatprep.subr.bf16.mxu1 %v1610_v0  ;;  %1256 = vmatprep.subr.bf16.mxu0 %v1610_v0  ;;  %v407_v38 = vadd.f32 %v406_v26, %v404_v31  ;;  %v408_v40 = vadd.f32 %v406_v26, %v405_v35  ;;  %v806_v62 = vstv %s1960_s15  ;;  %v534_v63 = vmul.f32 %v1933_v17, %v533_v58  ;;  %v1411_v26 = vld [vmem:[#allocation10 + $0x78] sm:$0xff]  }
  0xa8   : > { %v677_v41 = vadd.f32 %v676_v33, %v674_v36  ;;  %v678_v43 = vadd.f32 %v676_v33, %v675_v39  ;;  %v535_v1 = vmul.f32 %v1935_v18, %v533_v58  ;;  %v537_v2 = vmul.f32 %v1937_v19, %v536_v59 }
  0xa9   : > { %v409_v42 = vmax.f32 %v407_v38, 0.0  ;;  %v410_v45 = vmax.f32 %v408_v40, 0.0  ;;  %v538_v3 = vmul.f32 %v1939_v20, %v536_v59  ;;  %v804_v5 = vmul.f32 %v1933_v17, %v803_v61 }
  0xaa   : > { %1217 = vmatpush3.bf16.msra.mxu1 %v1387_v7  ;;  %1257 = vmatpush3.bf16.msra.mxu0 %v1388_v8  ;;  %v679_v46 = vmax.f32 %v677_v41, 0.0  ;;  %v680_v48 = vmax.f32 %v678_v43, 0.0  ;;  %v805_v6 = vmul.f32 %v1935_v18, %v803_v61  ;;  %v807_v7 = vmul.f32 %v1937_v19, %v806_v62  ;;  %v1171_v41 = vld [vmem:[%s316_s2] sm:$0xff]  }
  0xab   : > { %1218 = vmatprep.subr.bf16.mxu1 %v1610_v0  ;;  %1258 = vmatprep.subr.bf16.mxu0 %v1610_v0  ;;  %v411_v49 = vpack.c.bf16 %v410_v45, %v409_v42  ;;  %v808_v8 = vmul.f32 %v1939_v20, %v806_v62  ;;  %v540_v11 = vadd.f32 %v538_v3, %v535_v1  ;;  %v541_v13 = vstv %s1969_s18  ;;  %v1409_v20 = vld [vmem:[#allocation10 + $0x70] sm:$0xff]  }
  0xac   : > { %v681_v51 = vpack.c.bf16 %v680_v48, %v679_v46  ;;  %v809_v14 = vadd.f32 %v807_v7, %v804_v5  ;;  %v811_v17 = vstv %s1972_s24 }
  0xad   : > { %v810_v15 = vadd.f32 %v808_v8, %v805_v6  ;;  %v543_v19 = vadd.f32 %v541_v13, %v540_v11 }
  0xae   : > { %1219 = vmatpush3.bf16.msra.mxu1 %v1389_v9  ;;  %1259 = vmatpush3.bf16.msra.mxu0 %v1390_v10  ;;  %v1406_v9 = vld [vmem:[#allocation10 + $0xe0] sm:$0xff]   ;;  %v539_v10 = vadd.f32 %v537_v2, %v534_v63 }
  0xaf   : > { %1220 = vmatprep.subr.bf16.mxu1 %v1610_v0  ;;  %1260 = vmatprep.subr.bf16.mxu0 %v1610_v0  ;;  %v545_v25 = vmax.f32 %v543_v19, 0.0 }
  0xb0   : > { %v542_v18 = vadd.f32 %v541_v13, %v539_v10 }
  0xb2   : > { %1221 = vmatpush3.bf16.msra.mxu1 %v1391_v21  ;;  %1261 = vmatpush3.bf16.msra.mxu0 %v1392_v22  ;;  %v812_v21 = vadd.f32 %v811_v17, %v809_v14  ;;  %v813_v22 = vadd.f32 %v811_v17, %v810_v15  ;;  %v544_v24 = vmax.f32 %v542_v18, 0.0 }
  0xb3   : > { %1222 = vmatprep.subr.bf16.mxu1 %v1610_v0  ;;  %1262 = vmatprep.subr.bf16.mxu0 %v1610_v0 }
  0xb4   : > { %v814_v27 = vmax.f32 %v812_v21, 0.0  ;;  %v815_v28 = vmax.f32 %v813_v22, 0.0  ;;  %v546_v30 = vpack.c.bf16 %v545_v25, %v544_v24 }
  0xb6   : > { %1223 = vmatpush3.bf16.msra.mxu1 %v1393_v34  ;;  %1263 = vmatpush3.bf16.msra.mxu0 %v1394_v37  ;;  %v816_v31 = vpack.c.bf16 %v815_v28, %v814_v27  ;;  %v1155_v34 = vld [vmem:[%s2029_s5] ss:$0 sm:$0xff] }
  0xb7   : > { %1224 = vmatprep.subr.bf16.mxu1 %v1610_v0  ;;  %1264 = vmatprep.subr.bf16.mxu0 %v1610_v0 }
  0xba   : > { %1225 = vmatpush3.bf16.msra.mxu1 %v1395_v44  ;;  %1265 = vmatpush3.bf16.msra.mxu0 %v1396_v47  ;;  %v1172_v47 = vunpack.c.l.bf16 %v1171_v41 }
  0xbb   : > { %1230 = vmatprep.subr.bf16.mxu1 %v1610_v0  ;;  %1270 = vmatprep.subr.bf16.mxu0 %v1610_v0 }
  0xbd   : > { %1227 = vmatmul.mubr.bf16.vlgmr.msra.gmra.mrb[0].mxu1 %v411_v49  ;;  %1267 = vmatmul.mubr.bf16.vlgmr.msra.gmra.mrb[0].mxu0 %v681_v51 }
  0xbe   : > { %1231 = vmatpush3.bf16.msra.mxu1 %v1397_v50  ;;  %1271 = vmatpush3.bf16.msra.mxu0 %v1398_v52  ;;  %v1173_v52 = vunpack.c.h.bf16 %v1171_v41 }
  0xbf   : > { %1232 = vmatprep.subr.bf16.mxu1 %v1610_v0  ;;  %1272 = vmatprep.subr.bf16.mxu0 %v1610_v0 }
  0xc0   : > { %1246 = vmatprep.mubr.msk.bf16.mxu1 %vm1611_vm0, %v1610_v0  ;;  %1286 = vmatprep.mubr.msk.bf16.mxu0 %vm1611_vm0, %v1610_v0 }
  0xc2   : > { %1233 = vmatpush3.bf16.msra.mxu1 %v1399_v53  ;;  %1273 = vmatpush3.bf16.msra.mxu0 %v1400_v54 }
  0xc3   : > { %1234 = vmatprep.subr.bf16.mxu1 %v1610_v0  ;;  %1274 = vmatprep.subr.bf16.mxu0 %v1610_v0 }
  0xc6   : > { %1235 = vmatpush3.bf16.msra.mxu1 %v1401_v55  ;;  %1275 = vmatpush3.bf16.msra.mxu0 %v1402_v56 }
  0xc7   : > { %1236 = vmatprep.subr.bf16.mxu1 %v1610_v0  ;;  %1276 = vmatprep.subr.bf16.mxu0 %v1610_v0 }
  0xca   : > { %1237 = vmatpush3.bf16.msra.mxu1 %v1403_v57  ;;  %1277 = vmatpush3.bf16.msra.mxu0 %v1404_v60 }
  0xcb   : > { %1238 = vmatprep.subr.bf16.mxu1 %v1610_v0  ;;  %1278 = vmatprep.subr.bf16.mxu0 %v1610_v0 }
  0xce   : > { %1239 = vmatpush3.bf16.msra.mxu1 %v1405_v4  ;;  %1279 = vmatpush3.bf16.msra.mxu0 %v1406_v9 }
  0xcf   : > { %1240 = vmatprep.subr.bf16.mxu1 %v1610_v0  ;;  %1280 = vmatprep.subr.bf16.mxu0 %v1610_v0 }
  0xd2   : > { %1241 = vmatpush3.bf16.msra.mxu1 %v1407_v12  ;;  %1281 = vmatpush3.bf16.msra.mxu0 %v1408_v16 }
  0xd3   : > { %1242 = vmatprep.subr.bf16.mxu1 %v1610_v0  ;;  %1282 = vmatprep.subr.bf16.mxu0 %v1610_v0 }
  0xd6   : > { %1243 = vmatpush3.bf16.msra.mxu1 %v1409_v20  ;;  %1283 = vmatpush3.bf16.msra.mxu0 %v1410_v23 }
  0xd7   : > { %1244 = vmatprep.subr.bf16.mxu1 %v1610_v0  ;;  %1284 = vmatprep.subr.bf16.mxu0 %v1610_v0  ;;  %v1156_v0 = vld [vmem:[%s2029_s5 + $0x1] ss:$0 sm:$0xff] }
  0xda   : > { %1245 = vmatpush3.bf16.msra.mxu1 %v1411_v26  ;;  %1285 = vmatpush3.bf16.msra.mxu0 %v1412_v29 }
  0xdd   : > { %1247 = vmatmul.mubr.bf16.vlgmr.msra.gmra.mrb[0].mxu1 %v546_v30  ;;  %1287 = vmatmul.mubr.bf16.vlgmr.msra.gmra.mrb[0].mxu0 %v816_v31 }
 0x1b0   : > { %v645_v32 = vpop.f32.mrb[0].mxu1  ;;  %v915_v33 = vpop.f32.mrb[0].mxu0 }
 0x1b1   : > { %v1248_v35 = vpop.f32.mrb[1].mxu1  ;;  %v1290_v36 = vadd.f32 %v915_v33, %v645_v32  ;;  %v1288_v37 = vpop.f32.mrb[1].mxu0 }
 0x1b2   : > { %v648_v38 = vpop.f32.mrb[2].mxu1  ;;  %v918_v39 = vpop.f32.mrb[2].mxu0 }
 0x1b3   : > { %v1249_v40 = vpop.f32.mrb[3].mxu1  ;;  %v936_v42 = vmul.f32 %v1290_v36, %v1155_v34  ;;  %v1291_v43 = vadd.f32 %v918_v39, %v648_v38  ;;  %v1289_v44 = vpop.f32.mrb[3].mxu0 }
 0x1b5   : > { %v937_v45 = vmul.f32 %v1291_v43, %v1155_v34  ;;  %v943_v46 = vadd.f32 %v1156_v0, %v936_v42 }
 0x1b7   : > { %v945_v48 = vmax.f32 %v943_v46, 0.0  ;;  %v944_v49 = vadd.f32 %v1156_v0, %v937_v45 }
 0x1b9   : > { %v951_v50 = vmul.f32 %v1172_v47, %v945_v48  ;;  %v946_v51 = vmax.f32 %v944_v49, 0.0 }
 0x1bb   : > { %953 = vadd.xlane.f32.xlu0 %v951_v50  ;;  %v952_v53 = vmul.f32 %v1173_v52, %v946_v51 }
 0x1bf   : > { %955 = vadd.xlane.f32.xlu0 %v952_v53 }
 0x248   : > { %v954_v54 = vpop.xlane.xlu0 %953 }
 0x249   : > { %958 = vst.msk [vmem:[%s365_s20] sm:$0xff] %vm957_vm1, %v954_v54 }
 0x24c   : > { %v956_v55 = vpop.xlane.xlu0 %955 }
 0x24d   : > { %959 = vst.msk [vmem:[%s365_s20 + $0x8] sm:$0xff] %vm957_vm1, %v956_v55 }
 0x24e PF: > { %s27_s12 = sadd.s32 1, %s1601_s12   ;;  %s2067_s2 = sld [smem:[#allocation18_spill]] }
 0x24f   : > { %p24_p3 = scmp.ge.s32.totalorder %s27_s12, 4   ;;  %s2068_s10 = sld [smem:[#allocation16_spill]] }
 0x250   : > { %s2069_s11 = sld [smem:[#allocation17_spill]]  ;;  %s2070_s7 = smov %s1585_s8 }
 0x251   : > { %s2071_s8 = smov %s1589_s9  ;;  %26 = sbr.rel (!%p24_p3) target bundleno = 19 (0x13), region = 117 }
 0x254   : > { %s2072_s9 = smov %s2067_s2 }
 0x258   :  { %982 = vsyncpa [#allocation6], 1 }
 0x259   :  { %984 = vsyncpa [#allocation6 + $0x1], 1 }
 0x25a   :  { %985 = vsyncpa [#allocation8], 1 }
 0x25b   :  { %987 = vsyncpa [#allocation8 + $0x1], 1 }
 0x25c   :  { %988 = vsyncpa [#allocation11], 1 }

</bundles_post_ra>
